<compile_context>
chip_gen: v5e
topology: v5e:2x2
jax: 0.10.0
libtpu: 0.0.40
codegen_flags: <defaults>
</compile_context>

<pallas_src>
import functools
import math

import jax
import jax.numpy as jnp
from jax.experimental import pallas as pl
from jax.experimental.pallas import tpu as pltpu

_CTE = -0.5 * math.log(2.0 * math.pi)       # cancels in lqw - lpw
_PRIOR_SIGMA = 0.1                          # isotropic_gauss_prior(mu=0, sigma=0.1)
_PRIOR_DET = -math.log(_PRIOR_SIGMA)        # -log(sigma_prior)


def _softplus(x):
    # Matches F.softplus(x, beta=1, threshold=20): returns x for x > 20.
    return jnp.where(x > 20.0, x, jnp.log1p(jnp.exp(jnp.minimum(x, 20.0))))


# ----------------------------------------------------------------------------
# Fused kernel: all Bayesian layers + ReLU + regression head + KL, one sample
# per grid step.  ref layout:  x, [param_pack, eps_pack] * n_layers, out
#   param_pack: (2, n_in+1, n_out)   [0]=mu (W rows + b row), [1]=rho
#   eps_pack:   (1, n_in+1, n_out)   this sample's eps (W rows + b row)
#   out:        (1, B+1, 2*D)        rows[:B]=[mean|var], row[B]=KL (broadcast)
# ----------------------------------------------------------------------------
def _bnn_fused_kernel(*refs, n_layers, output_dim):
    x_ref = refs[0]
    layer_refs = refs[1:1 + 2 * n_layers]
    out_ref = refs[1 + 2 * n_layers]

    x = x_ref[...].astype(jnp.float32)              # (B, n_in), stays in VMEM/vregs
    kl = jnp.float32(0.0)
    half = jnp.float32(0.5)
    inv_ps = jnp.float32(1.0 / _PRIOR_SIGMA)

    for i in range(n_layers):
        params_ref = layer_refs[2 * i]
        eps_ref = layer_refs[2 * i + 1]

        mu = params_ref[0]                          # (n_in+1, n_out): W_mu rows + b_mu row
        rho = params_ref[1]                         # W_p rows + b_p row
        eps = eps_ref[0]                            # eps_W rows + eps_b row

        # Reparameterized sample; std computed once and reused by the KL term.
        std = 1e-6 + _softplus(rho)
        theta = mu + std * eps                      # [:-1]=W sample, [-1:]=b sample

        w = theta[:-1, :]
        b = theta[-1:, :]
        x = jnp.dot(x, w, preferred_element_type=jnp.float32) + b
        if i < n_layers - 1:
            x = jnp.maximum(x, 0.0)

        # KL contribution (lqw - lpw), algebraically simplified:
        #   sum( 0.5*((theta/sigma_p)^2 - eps^2) - log(std) ) - N * (-log(sigma_p))
        # One full reduction per layer (W and b together).
        n_elems = params_ref.shape[1] * params_ref.shape[2]
        kl = (kl
              + jnp.sum(half * ((theta * inv_ps) ** 2 - eps * eps) - jnp.log(std))
              - jnp.float32(n_elems) * jnp.float32(_PRIOR_DET))

    # Regression head packed into the single output block.
    D = output_dim
    B = x.shape[0]
    out_ref[0, :B, :D] = x[:, :D]                               # mean
    out_ref[0, :B, D:] = _softplus(x[:, D:]) + 1e-6             # variance
    out_ref[0, B:, :] = jnp.full((1, 2 * D), kl, jnp.float32)   # KL (broadcast row)


def bnn_forward(x, params, eps_list, output_dim):
    """Fused BayesianNetwork forward (task='regression') over S Monte-Carlo samples.

    x:        (B, input_dim)
    params:   per layer (w_mu (n_in,n_out), w_p (n_in,n_out), b_mu (n_out,), b_p (n_out,))
    eps_list: per layer (eps_w (S,n_in,n_out), eps_b (S,n_out))
    Returns (mean (S,B,D), var (S,B,D), kl (S,)).
    """
    n_layers = len(params)
    B, n_in0 = x.shape
    S = eps_list[0][0].shape[0]
    D = output_dim

    flat_inputs = [x.astype(jnp.float32)]
    in_specs = [pl.BlockSpec((B, n_in0), lambda s: (0, 0))]
    for (w_mu, w_p, b_mu, b_p), (eps_w, eps_b) in zip(params, eps_list):
        n_in, n_out = w_mu.shape
        mu_pack = jnp.concatenate([w_mu, b_mu.reshape(1, -1)], axis=0)      # (n_in+1, n_out)
        p_pack = jnp.concatenate([w_p, b_p.reshape(1, -1)], axis=0)
        param_pack = jnp.stack([mu_pack, p_pack], axis=0)                   # (2, n_in+1, n_out)
        eps_pack = jnp.concatenate([eps_w, eps_b[:, None, :]], axis=1)      # (S, n_in+1, n_out)
        flat_inputs += [param_pack.astype(jnp.float32), eps_pack.astype(jnp.float32)]
        in_specs += [
            # Parameters: constant block index -> DMA'd once, VMEM-resident over samples.
            pl.BlockSpec((2, n_in + 1, n_out), lambda s: (0, 0, 0)),
            # eps: one sample slab per grid step.
            pl.BlockSpec((1, n_in + 1, n_out), lambda s: (s, 0, 0)),
        ]

    kernel = functools.partial(_bnn_fused_kernel, n_layers=n_layers, output_dim=D)
    out = pl.pallas_call(
        kernel,
        out_shape=jax.ShapeDtypeStruct((S, B + 1, 2 * D), jnp.float32),
        grid_spec=pltpu.PrefetchScalarGridSpec(
            num_scalar_prefetch=0,
            grid=(S,),
            in_specs=in_specs,
            out_specs=pl.BlockSpec((1, B + 1, 2 * D), lambda s: (s, 0, 0)),
        ),
        compiler_params=pltpu.CompilerParams(dimension_semantics=("parallel",)),
    )(*flat_inputs)

    mean = out[:, :B, :D]
    var = out[:, :B, D:]
    kl = out[:, B, 0]
    return mean, var, kl


# ----------------------------------------------------------------------------
# Pure-JAX reference (original, un-simplified math; one sample) for correctness.
# ----------------------------------------------------------------------------
def bnn_forward_ref(x, params, eps_sample, output_dim):
    kl_total = 0.0
    n_layers = len(params)
    for i, ((w_mu, w_p, b_mu, b_p), (eps_w, eps_b)) in enumerate(zip(params, eps_sample)):
        std_w = 1e-6 + _softplus(w_p)
        std_b = 1e-6 + _softplus(b_p)
        w = w_mu + std_w * eps_w
        b = b_mu + std_b * eps_b
        out = x @ w + b[None, :]
        lqw = (jnp.sum(_CTE - jnp.log(std_w) - 0.5 * ((w - w_mu) / std_w) ** 2)
               + jnp.sum(_CTE - jnp.log(std_b) - 0.5 * ((b - b_mu) / std_b) ** 2))
        lpw = (jnp.sum(_CTE + _PRIOR_DET - 0.5 * (w / _PRIOR_SIGMA) ** 2)
               + jnp.sum(_CTE + _PRIOR_DET - 0.5 * (b / _PRIOR_SIGMA) ** 2))
        kl_total = kl_total + (lqw - lpw)
        x = out if i == n_layers - 1 else jnp.maximum(out, 0.0)
    mean = x[:, :output_dim]
    var = _softplus(x[:, output_dim:]) + 1e-6
    return mean, var, kl_total


if __name__ == "__main__":
    key = jax.random.PRNGKey(0)

    batch = 8
    input_dim = 32
    output_dim = 2
    net_arch = [32, 16]
    n_samples = 4                     # Monte-Carlo samples in one pallas_call
    # task = 'regression' -> last layer has 2 * output_dim units
    dims = [input_dim] + net_arch + [2 * output_dim]

    params = []
    eps_list = []
    for i in range(len(dims) - 1):
        n_in, n_out = dims[i], dims[i + 1]
        key, k1, k2, k3, k4, k5, k6 = jax.random.split(key, 7)
        w_mu = jax.random.uniform(k1, (n_in, n_out), jnp.float32, -0.1, 0.1)
        w_p = jax.random.uniform(k2, (n_in, n_out), jnp.float32, -3.0, -2.0)
        b_mu = jax.random.uniform(k3, (n_out,), jnp.float32, -0.1, 0.1)
        b_p = jax.random.uniform(k4, (n_out,), jnp.float32, -3.0, -2.0)
        eps_w = jax.random.normal(k5, (n_samples, n_in, n_out), jnp.float32)
        eps_b = jax.random.normal(k6, (n_samples, n_out), jnp.float32)
        params.append((w_mu, w_p, b_mu, b_p))
        eps_list.append((eps_w, eps_b))

    key, kx = jax.random.split(key)
    x = jax.random.normal(kx, (batch, input_dim), jnp.float32)

    mean, var, kl = bnn_forward(x, params, eps_list, output_dim)
    jax.block_until_ready((mean, var, kl))

    for s in range(n_samples):
        eps_s = [(ew[s], eb[s]) for (ew, eb) in eps_list]
        mean_r, var_r, kl_r = bnn_forward_ref(x, params, eps_s, output_dim)
        assert jnp.allclose(mean[s], mean_r, rtol=1e-4, atol=1e-4), (s, mean[s], mean_r)
        assert jnp.allclose(var[s], var_r, rtol=1e-4, atol=1e-4), (s, var[s], var_r)
        assert jnp.allclose(kl[s], kl_r, rtol=1e-4, atol=1e-3), (s, kl[s], kl_r)

    print("KERNEL_OK")
</pallas_src>

<mosaic_0001>
module attributes {stable_mosaic.version = 11 : i64} {
  func.func @_bnn_fused_kernel(%arg0: i32, %arg1: memref<8x32xf32, #tpu.memory_space<vmem>>, %arg2: memref<2x33x32xf32, #tpu.memory_space<vmem>>, %arg3: memref<1x33x32xf32, #tpu.memory_space<vmem>>, %arg4: memref<2x33x16xf32, #tpu.memory_space<vmem>>, %arg5: memref<1x33x16xf32, #tpu.memory_space<vmem>>, %arg6: memref<2x17x4xf32, #tpu.memory_space<vmem>>, %arg7: memref<1x17x4xf32, #tpu.memory_space<vmem>>, %arg8: memref<1x9x4xf32, #tpu.memory_space<vmem>>) attributes {dimension_semantics = [#tpu.dimension_semantics<parallel>], iteration_bounds = array<i64: 4>, scalar_prefetch = 0 : i64, scratch_operands = 0 : i64, tpu.core_type = #tpu.core_type<tc>, window_params = [{pipeline_mode = #tpu.pipeline_mode<synchronous>, transform_indices = @transform_0, window_bounds = array<i64: 8, 32>}, {pipeline_mode = #tpu.pipeline_mode<synchronous>, transform_indices = @transform_1, window_bounds = array<i64: 2, 33, 32>}, {transform_indices = @transform_2, window_bounds = array<i64: 1, 33, 32>}, {pipeline_mode = #tpu.pipeline_mode<synchronous>, transform_indices = @transform_3, window_bounds = array<i64: 2, 33, 16>}, {transform_indices = @transform_4, window_bounds = array<i64: 1, 33, 16>}, {pipeline_mode = #tpu.pipeline_mode<synchronous>, transform_indices = @transform_5, window_bounds = array<i64: 2, 17, 4>}, {transform_indices = @transform_6, window_bounds = array<i64: 1, 17, 4>}, {transform_indices = @transform_7, window_bounds = array<i64: 1, 9, 4>}]} {
    %c0 = arith.constant 0 : index
    %c0_0 = arith.constant 0 : index
    %0 = vector.load %arg1[%c0, %c0_0] : memref<8x32xf32, #tpu.memory_space<vmem>>, vector<8x32xf32>
    %c0_1 = arith.constant 0 : index
    %c0_2 = arith.constant 0 : index
    %c0_3 = arith.constant 0 : index
    %1 = vector.load %arg2[%c0_1, %c0_2, %c0_3] : memref<2x33x32xf32, #tpu.memory_space<vmem>>, vector<1x33x32xf32>
    %2 = vector.shape_cast %1 : vector<1x33x32xf32> to vector<33x32xf32>
    %c1 = arith.constant 1 : index
    %c0_4 = arith.constant 0 : index
    %c0_5 = arith.constant 0 : index
    %3 = vector.load %arg2[%c1, %c0_4, %c0_5] : memref<2x33x32xf32, #tpu.memory_space<vmem>>, vector<1x33x32xf32>
    %4 = vector.shape_cast %3 : vector<1x33x32xf32> to vector<33x32xf32>
    %c0_6 = arith.constant 0 : index
    %c0_7 = arith.constant 0 : index
    %c0_8 = arith.constant 0 : index
    %5 = vector.load %arg3[%c0_6, %c0_7, %c0_8] : memref<1x33x32xf32, #tpu.memory_space<vmem>>, vector<1x33x32xf32>
    %6 = vector.shape_cast %5 : vector<1x33x32xf32> to vector<33x32xf32>
    %cst = arith.constant 2.000000e+01 : f32
    %7 = vector.broadcast %cst : f32 to vector<33x32xf32>
    %8 = arith.cmpf ogt, %4, %7 : vector<33x32xf32>
    %cst_9 = arith.constant 2.000000e+01 : f32
    %9 = vector.broadcast %cst_9 : f32 to vector<33x32xf32>
    %10 = arith.minimumf %4, %9 : vector<33x32xf32>
    %11 = math.exp %10 : vector<33x32xf32>
    %12 = math.log1p %11 : vector<33x32xf32>
    %13 = arith.select %8, %4, %12 : vector<33x32xi1>, vector<33x32xf32>
    %cst_10 = arith.constant 9.99999997E-7 : f32
    %14 = vector.broadcast %cst_10 : f32 to vector<33x32xf32>
    %15 = arith.addf %14, %13 : vector<33x32xf32>
    %16 = arith.mulf %15, %6 : vector<33x32xf32>
    %17 = arith.addf %2, %16 : vector<33x32xf32>
    %18 = vector.extract_strided_slice %17 {offsets = [0, 0], sizes = [32, 32], strides = [1, 1]} : vector<33x32xf32> to vector<32x32xf32>
    %19 = vector.extract_strided_slice %17 {offsets = [32, 0], sizes = [1, 32], strides = [1, 1]} : vector<33x32xf32> to vector<1x32xf32>
    %cst_11 = arith.constant dense<0.000000e+00> : vector<8x32xf32>
    %20 = tpu.matmul %0, %18, %cst_11 {dimension_numbers = #tpu.dot_dimension_numbers<[1], [0], [0], [1], [0, 0, 1, 1], [], []>} : vector<8x32xf32>, vector<32x32xf32>, vector<8x32xf32> -> vector<8x32xf32>
    %21 = vector.broadcast %19 : vector<1x32xf32> to vector<8x32xf32>
    %22 = arith.addf %20, %21 : vector<8x32xf32>
    %cst_12 = arith.constant 0.000000e+00 : f32
    %23 = vector.broadcast %cst_12 : f32 to vector<8x32xf32>
    %24 = arith.maximumf %22, %23 : vector<8x32xf32>
    %cst_13 = arith.constant 1.000000e+01 : f32
    %25 = vector.broadcast %cst_13 : f32 to vector<33x32xf32>
    %26 = arith.mulf %17, %25 : vector<33x32xf32>
    %27 = arith.mulf %26, %26 : vector<33x32xf32>
    %28 = arith.mulf %6, %6 : vector<33x32xf32>
    %29 = arith.subf %27, %28 : vector<33x32xf32>
    %cst_14 = arith.constant 5.000000e-01 : f32
    %30 = vector.broadcast %cst_14 : f32 to vector<33x32xf32>
    %31 = arith.mulf %30, %29 : vector<33x32xf32>
    %32 = math.log %15 : vector<33x32xf32>
    %33 = arith.subf %31, %32 : vector<33x32xf32>
    %34 = vector.shape_cast %33 : vector<33x32xf32> to vector<1x33x32xf32>
    %cst_15 = arith.constant dense<0.000000e+00> : vector<1xf32>
    %35 = vector.multi_reduction <add>, %34, %cst_15 [1, 2] : vector<1x33x32xf32> to vector<1xf32>
    %36 = vector.shape_cast %35 : vector<1xf32> to vector<1x1x1xf32>
    %37 = vector.extract %36[0, 0, 0] : f32 from vector<1x1x1xf32>
    %cst_16 = arith.constant 0.000000e+00 : f32
    %38 = arith.addf %cst_16, %37 : f32
    %cst_17 = arith.constant 1.056000e+03 : f32
    %cst_18 = arith.constant 2.30258512 : f32
    %39 = arith.mulf %cst_17, %cst_18 : f32
    %40 = arith.subf %38, %39 : f32
    %c0_19 = arith.constant 0 : index
    %c0_20 = arith.constant 0 : index
    %c0_21 = arith.constant 0 : index
    %41 = vector.load %arg4[%c0_19, %c0_20, %c0_21] : memref<2x33x16xf32, #tpu.memory_space<vmem>>, vector<1x33x16xf32>
    %42 = vector.shape_cast %41 : vector<1x33x16xf32> to vector<33x16xf32>
    %c1_22 = arith.constant 1 : index
    %c0_23 = arith.constant 0 : index
    %c0_24 = arith.constant 0 : index
    %43 = vector.load %arg4[%c1_22, %c0_23, %c0_24] : memref<2x33x16xf32, #tpu.memory_space<vmem>>, vector<1x33x16xf32>
    %44 = vector.shape_cast %43 : vector<1x33x16xf32> to vector<33x16xf32>
    %c0_25 = arith.constant 0 : index
    %c0_26 = arith.constant 0 : index
    %c0_27 = arith.constant 0 : index
    %45 = vector.load %arg5[%c0_25, %c0_26, %c0_27] : memref<1x33x16xf32, #tpu.memory_space<vmem>>, vector<1x33x16xf32>
    %46 = vector.shape_cast %45 : vector<1x33x16xf32> to vector<33x16xf32>
    %cst_28 = arith.constant 2.000000e+01 : f32
    %47 = vector.broadcast %cst_28 : f32 to vector<33x16xf32>
    %48 = arith.cmpf ogt, %44, %47 : vector<33x16xf32>
    %cst_29 = arith.constant 2.000000e+01 : f32
    %49 = vector.broadcast %cst_29 : f32 to vector<33x16xf32>
    %50 = arith.minimumf %44, %49 : vector<33x16xf32>
    %51 = math.exp %50 : vector<33x16xf32>
    %52 = math.log1p %51 : vector<33x16xf32>
    %53 = arith.select %48, %44, %52 : vector<33x16xi1>, vector<33x16xf32>
    %cst_30 = arith.constant 9.99999997E-7 : f32
    %54 = vector.broadcast %cst_30 : f32 to vector<33x16xf32>
    %55 = arith.addf %54, %53 : vector<33x16xf32>
    %56 = arith.mulf %55, %46 : vector<33x16xf32>
    %57 = arith.addf %42, %56 : vector<33x16xf32>
    %58 = vector.extract_strided_slice %57 {offsets = [0, 0], sizes = [32, 16], strides = [1, 1]} : vector<33x16xf32> to vector<32x16xf32>
    %59 = vector.extract_strided_slice %57 {offsets = [32, 0], sizes = [1, 16], strides = [1, 1]} : vector<33x16xf32> to vector<1x16xf32>
    %cst_31 = arith.constant dense<0.000000e+00> : vector<8x16xf32>
    %60 = tpu.matmul %24, %58, %cst_31 {dimension_numbers = #tpu.dot_dimension_numbers<[1], [0], [0], [1], [0, 0, 1, 1], [], []>} : vector<8x32xf32>, vector<32x16xf32>, vector<8x16xf32> -> vector<8x16xf32>
    %61 = vector.broadcast %59 : vector<1x16xf32> to vector<8x16xf32>
    %62 = arith.addf %60, %61 : vector<8x16xf32>
    %cst_32 = arith.constant 0.000000e+00 : f32
    %63 = vector.broadcast %cst_32 : f32 to vector<8x16xf32>
    %64 = arith.maximumf %62, %63 : vector<8x16xf32>
    %cst_33 = arith.constant 1.000000e+01 : f32
    %65 = vector.broadcast %cst_33 : f32 to vector<33x16xf32>
    %66 = arith.mulf %57, %65 : vector<33x16xf32>
    %67 = arith.mulf %66, %66 : vector<33x16xf32>
    %68 = arith.mulf %46, %46 : vector<33x16xf32>
    %69 = arith.subf %67, %68 : vector<33x16xf32>
    %cst_34 = arith.constant 5.000000e-01 : f32
    %70 = vector.broadcast %cst_34 : f32 to vector<33x16xf32>
    %71 = arith.mulf %70, %69 : vector<33x16xf32>
    %72 = math.log %55 : vector<33x16xf32>
    %73 = arith.subf %71, %72 : vector<33x16xf32>
    %74 = vector.shape_cast %73 : vector<33x16xf32> to vector<1x33x16xf32>
    %cst_35 = arith.constant dense<0.000000e+00> : vector<1xf32>
    %75 = vector.multi_reduction <add>, %74, %cst_35 [1, 2] : vector<1x33x16xf32> to vector<1xf32>
    %76 = vector.shape_cast %75 : vector<1xf32> to vector<1x1x1xf32>
    %77 = vector.extract %76[0, 0, 0] : f32 from vector<1x1x1xf32>
    %78 = arith.addf %40, %77 : f32
    %cst_36 = arith.constant 5.280000e+02 : f32
    %cst_37 = arith.constant 2.30258512 : f32
    %79 = arith.mulf %cst_36, %cst_37 : f32
    %80 = arith.subf %78, %79 : f32
    %c0_38 = arith.constant 0 : index
    %c0_39 = arith.constant 0 : index
    %c0_40 = arith.constant 0 : index
    %81 = vector.load %arg6[%c0_38, %c0_39, %c0_40] : memref<2x17x4xf32, #tpu.memory_space<vmem>>, vector<1x17x4xf32>
    %82 = vector.shape_cast %81 : vector<1x17x4xf32> to vector<17x4xf32>
    %c1_41 = arith.constant 1 : index
    %c0_42 = arith.constant 0 : index
    %c0_43 = arith.constant 0 : index
    %83 = vector.load %arg6[%c1_41, %c0_42, %c0_43] : memref<2x17x4xf32, #tpu.memory_space<vmem>>, vector<1x17x4xf32>
    %84 = vector.shape_cast %83 : vector<1x17x4xf32> to vector<17x4xf32>
    %c0_44 = arith.constant 0 : index
    %c0_45 = arith.constant 0 : index
    %c0_46 = arith.constant 0 : index
    %85 = vector.load %arg7[%c0_44, %c0_45, %c0_46] : memref<1x17x4xf32, #tpu.memory_space<vmem>>, vector<1x17x4xf32>
    %86 = vector.shape_cast %85 : vector<1x17x4xf32> to vector<17x4xf32>
    %cst_47 = arith.constant 2.000000e+01 : f32
    %87 = vector.broadcast %cst_47 : f32 to vector<17x4xf32>
    %88 = arith.cmpf ogt, %84, %87 : vector<17x4xf32>
    %cst_48 = arith.constant 2.000000e+01 : f32
    %89 = vector.broadcast %cst_48 : f32 to vector<17x4xf32>
    %90 = arith.minimumf %84, %89 : vector<17x4xf32>
    %91 = math.exp %90 : vector<17x4xf32>
    %92 = math.log1p %91 : vector<17x4xf32>
    %93 = arith.select %88, %84, %92 : vector<17x4xi1>, vector<17x4xf32>
    %cst_49 = arith.constant 9.99999997E-7 : f32
    %94 = vector.broadcast %cst_49 : f32 to vector<17x4xf32>
    %95 = arith.addf %94, %93 : vector<17x4xf32>
    %96 = arith.mulf %95, %86 : vector<17x4xf32>
    %97 = arith.addf %82, %96 : vector<17x4xf32>
    %98 = vector.extract_strided_slice %97 {offsets = [0, 0], sizes = [16, 4], strides = [1, 1]} : vector<17x4xf32> to vector<16x4xf32>
    %99 = vector.extract_strided_slice %97 {offsets = [16, 0], sizes = [1, 4], strides = [1, 1]} : vector<17x4xf32> to vector<1x4xf32>
    %cst_50 = arith.constant dense<0.000000e+00> : vector<8x4xf32>
    %100 = tpu.matmul %64, %98, %cst_50 {dimension_numbers = #tpu.dot_dimension_numbers<[1], [0], [0], [1], [0, 0, 1, 1], [], []>} : vector<8x16xf32>, vector<16x4xf32>, vector<8x4xf32> -> vector<8x4xf32>
    %101 = vector.broadcast %99 : vector<1x4xf32> to vector<8x4xf32>
    %102 = arith.addf %100, %101 : vector<8x4xf32>
    %cst_51 = arith.constant 1.000000e+01 : f32
    %103 = vector.broadcast %cst_51 : f32 to vector<17x4xf32>
    %104 = arith.mulf %97, %103 : vector<17x4xf32>
    %105 = arith.mulf %104, %104 : vector<17x4xf32>
    %106 = arith.mulf %86, %86 : vector<17x4xf32>
    %107 = arith.subf %105, %106 : vector<17x4xf32>
    %cst_52 = arith.constant 5.000000e-01 : f32
    %108 = vector.broadcast %cst_52 : f32 to vector<17x4xf32>
    %109 = arith.mulf %108, %107 : vector<17x4xf32>
    %110 = math.log %95 : vector<17x4xf32>
    %111 = arith.subf %109, %110 : vector<17x4xf32>
    %112 = vector.shape_cast %111 : vector<17x4xf32> to vector<1x17x4xf32>
    %cst_53 = arith.constant dense<0.000000e+00> : vector<1xf32>
    %113 = vector.multi_reduction <add>, %112, %cst_53 [1, 2] : vector<1x17x4xf32> to vector<1xf32>
    %114 = vector.shape_cast %113 : vector<1xf32> to vector<1x1x1xf32>
    %115 = vector.extract %114[0, 0, 0] : f32 from vector<1x1x1xf32>
    %116 = arith.addf %80, %115 : f32
    %cst_54 = arith.constant 6.800000e+01 : f32
    %cst_55 = arith.constant 2.30258512 : f32
    %117 = arith.mulf %cst_54, %cst_55 : f32
    %118 = arith.subf %116, %117 : f32
    %119 = vector.extract_strided_slice %102 {offsets = [0, 0], sizes = [8, 2], strides = [1, 1]} : vector<8x4xf32> to vector<8x2xf32>
    %c0_56 = arith.constant 0 : index
    %c0_57 = arith.constant 0 : index
    %c0_58 = arith.constant 0 : index
    %120 = vector.load %arg8[%c0_56, %c0_57, %c0_58] : memref<1x9x4xf32, #tpu.memory_space<vmem>>, vector<1x8x2xf32>
    %121 = vector.shape_cast %120 : vector<1x8x2xf32> to vector<8x2xf32>
    %122 = vector.shape_cast %119 : vector<8x2xf32> to vector<1x8x2xf32>
    tpu.vector_store %arg8[%c0_56, %c0_57, %c0_58], %122 {strides = array<i32>} : memref<1x9x4xf32, #tpu.memory_space<vmem>>, vector<1x8x2xf32>,
    %123 = vector.extract_strided_slice %102 {offsets = [0, 2], sizes = [8, 2], strides = [1, 1]} : vector<8x4xf32> to vector<8x2xf32>
    %cst_59 = arith.constant 2.000000e+01 : f32
    %124 = vector.broadcast %cst_59 : f32 to vector<8x2xf32>
    %125 = arith.cmpf ogt, %123, %124 : vector<8x2xf32>
    %cst_60 = arith.constant 2.000000e+01 : f32
    %126 = vector.broadcast %cst_60 : f32 to vector<8x2xf32>
    %127 = arith.minimumf %123, %126 : vector<8x2xf32>
    %128 = math.exp %127 : vector<8x2xf32>
    %129 = math.log1p %128 : vector<8x2xf32>
    %130 = arith.select %125, %123, %129 : vector<8x2xi1>, vector<8x2xf32>
    %cst_61 = arith.constant 9.99999997E-7 : f32
    %131 = vector.broadcast %cst_61 : f32 to vector<8x2xf32>
    %132 = arith.addf %130, %131 : vector<8x2xf32>
    %c0_62 = arith.constant 0 : index
    %c0_63 = arith.constant 0 : index
    %c2 = arith.constant 2 : index
    %133 = vector.load %arg8[%c0_62, %c0_63, %c2] : memref<1x9x4xf32, #tpu.memory_space<vmem>>, vector<1x8x2xf32>
    %134 = vector.shape_cast %133 : vector<1x8x2xf32> to vector<8x2xf32>
    %135 = vector.shape_cast %132 : vector<8x2xf32> to vector<1x8x2xf32>
    tpu.vector_store %arg8[%c0_62, %c0_63, %c2], %135 {strides = array<i32>} : memref<1x9x4xf32, #tpu.memory_space<vmem>>, vector<1x8x2xf32>,
    %136 = vector.broadcast %118 : f32 to vector<1x4xf32>
    %c0_64 = arith.constant 0 : index
    %c8 = arith.constant 8 : index
    %c0_65 = arith.constant 0 : index
    %137 = vector.load %arg8[%c0_64, %c8, %c0_65] : memref<1x9x4xf32, #tpu.memory_space<vmem>>, vector<1x1x4xf32>
    %138 = vector.shape_cast %137 : vector<1x1x4xf32> to vector<1x4xf32>
    %139 = vector.shape_cast %136 : vector<1x4xf32> to vector<1x1x4xf32>
    tpu.vector_store %arg8[%c0_64, %c8, %c0_65], %139 {strides = array<i32>} : memref<1x9x4xf32, #tpu.memory_space<vmem>>, vector<1x1x4xf32>,
    return
  }
  func.func @transform_0(%arg0: i32) -> (i32, i32) {
    %c0_i32 = arith.constant 0 : i32
    %c0_i32_0 = arith.constant 0 : i32
    %c0_i32_1 = arith.constant 0 : i32
    return %c0_i32, %c0_i32_0 : i32, i32
  }
  func.func @transform_1(%arg0: i32) -> (i32, i32, i32) {
    %c0_i32 = arith.constant 0 : i32
    %c0_i32_0 = arith.constant 0 : i32
    %c0_i32_1 = arith.constant 0 : i32
    %c0_i32_2 = arith.constant 0 : i32
    return %c0_i32, %c0_i32_0, %c0_i32_1 : i32, i32, i32
  }
  func.func @transform_2(%arg0: i32) -> (i32, i32, i32) {
    %c0_i32 = arith.constant 0 : i32
    %c0_i32_0 = arith.constant 0 : i32
    %c0_i32_1 = arith.constant 0 : i32
    return %arg0, %c0_i32, %c0_i32_0 : i32, i32, i32
  }
  func.func @transform_3(%arg0: i32) -> (i32, i32, i32) {
    %c0_i32 = arith.constant 0 : i32
    %c0_i32_0 = arith.constant 0 : i32
    %c0_i32_1 = arith.constant 0 : i32
    %c0_i32_2 = arith.constant 0 : i32
    return %c0_i32, %c0_i32_0, %c0_i32_1 : i32, i32, i32
  }
  func.func @transform_4(%arg0: i32) -> (i32, i32, i32) {
    %c0_i32 = arith.constant 0 : i32
    %c0_i32_0 = arith.constant 0 : i32
    %c0_i32_1 = arith.constant 0 : i32
    return %arg0, %c0_i32, %c0_i32_0 : i32, i32, i32
  }
  func.func @transform_5(%arg0: i32) -> (i32, i32, i32) {
    %c0_i32 = arith.constant 0 : i32
    %c0_i32_0 = arith.constant 0 : i32
    %c0_i32_1 = arith.constant 0 : i32
    %c0_i32_2 = arith.constant 0 : i32
    return %c0_i32, %c0_i32_0, %c0_i32_1 : i32, i32, i32
  }
  func.func @transform_6(%arg0: i32) -> (i32, i32, i32) {
    %c0_i32 = arith.constant 0 : i32
    %c0_i32_0 = arith.constant 0 : i32
    %c0_i32_1 = arith.constant 0 : i32
    return %arg0, %c0_i32, %c0_i32_0 : i32, i32, i32
  }
  func.func @transform_7(%arg0: i32) -> (i32, i32, i32) {
    %c0_i32 = arith.constant 0 : i32
    %c0_i32_0 = arith.constant 0 : i32
    %c0_i32_1 = arith.constant 0 : i32
    return %arg0, %c0_i32, %c0_i32_0 : i32, i32, i32
  }
}

</mosaic_0001>

<bundles_post_ra>
// kernel: tpu_custom_call.1
= control target key start
LH: loop header
LB: loop body
LE: loop exit
PB: predicated region body
PF: predicated region fallthrough
CT: control target
= control target key end

     0   :  { %s1101_s24 = smov 0   ;;  %s1433_s0 = inlined_call_operand.vmem [shape: f32[8,32], index: 0, kind: input, shape index: {}]   ;;  %s1434_s1 = inlined_call_operand.vmem [shape: f32[2,33,32], index: 1, kind: input, shape index: {}]   ;;  %s1435_s2 = inlined_call_operand.vmem [shape: f32[4,33,32], index: 2, kind: input, shape index: {}]   ;;  %s1436_s3 = inlined_call_operand.vmem [shape: f32[2,33,16], index: 3, kind: input, shape index: {}]   ;;  %s1437_s4 = inlined_call_operand.vmem [shape: f32[4,33,16], index: 4, kind: input, shape index: {}]   ;;  %s1438_s5 = inlined_call_operand.vmem [shape: f32[2,17,4], index: 5, kind: input, shape index: {}]   ;;  %s1439_s6 = inlined_call_operand.vmem [shape: f32[4,17,4], index: 6, kind: input, shape index: {}]   ;;  %s1440_s7 = inlined_call_operand.vmem [shape: f32[4,9,4], index: 7, kind: output, shape index: {}]  }
   0x1 LB: > { %s923_s25 = sadd.s32 4294967295, %s1059_s24   ;;  %p927_p0 = scmp.ge.s32.totalorder %s1059_s24, 1  ;;  %s1059_s24 = sphi %s1101_s24, %s17_s24  }
   0x2   : > { %p257_p1 = scmp.lt.s32.totalorder %s1059_s24, 5 }
   0x4   : > { %p258_p2 = pnand %p927_p0, %p257_p1 }
   0x5   : > { %p299_p3 = scmp.lt.s32.totalorder (!%p258_p2), %s923_s25, 3 }
   0x6   : > { %261 = sbr.rel (%p258_p2) target bundleno = 470 (0x1d6), region = 48 }
   0xb   : > { %v1112_v0 = vld [vmem:[%s1434_s1 + $0x40] sm:$0xff]  ;;  %v1118_v2 = vld [vmem:[%s1434_s1 + $0x38] sm:$0xff]  ;;  %v1123_v3 = vld [vmem:[%s1434_s1 + $0x30] sm:$0xff]  ;;  %s1458_s25 = smov (!%p299_p3, %s923_s25), 3  ;;  %vm422_vm8 = vcmask 261120  }
   0xc   : > { %v344_v1 = vmin.f32 %v1112_v0, 20.0  ;;  %v343_v4 = vmin.f32 %v1118_v2, 20.0  ;;  %v342_v5 = vmin.f32 %v1123_v3, 20.0  ;;  %v1130_v7 = vld [vmem:[%s1434_s1 + $0x28] sm:$0xff]  ;;  %v1136_v13 = vld [vmem:[%s1436_s3 + $0x40] sm:$0xff]  ;;  %s955_s13 = smul.u32 40, %s1458_s25 }
   0xd   : > { %v341_v10 = vmin.f32 %v1130_v7, 20.0  ;;  %v532_v21 = vmin.f32 %v1136_v13, 20.0  ;;  %vm339_vm1 = vcmp.gt.f32.partialorder %v1112_v0, 20.0  ;;  %vm338_vm3 = vcmp.gt.f32.partialorder %v1118_v2, 20.0  ;;  %v323_v60 = vld [vmem:[%s1434_s1 + $0x18] sm:$0xff]  ;;  %s954_s14 = sshll.u32 %s1458_s25, 4 }
   0xe   : > { %v352_v6 = vmul.f32 1.442695, %v344_v1  ;;  %v350_v8 = vmul.f32 1.442695, %v343_v4  ;;  %v348_v9 = vmul.f32 1.442695, %v342_v5  ;;  %s1151_s16 = scalar_lea.vmem %s1435_s2, %s955_s13  ;;  %s1230_s8 = scalar_lea.vmem %s1437_s4, %s955_s13 }
   0xf   : > { %v346_v11 = vmul.f32 1.442695, %v341_v10  ;;  %v540_v32 = vmul.f32 1.442695, %v532_v21  ;;  %vm337_vm5 = vcmp.gt.f32.partialorder %v1123_v3, 20.0  ;;  %v334_v50 = vld [vmem:[%s1151_s16 + $0x18] sm:$0xff] }
  0x10   : > { %971 = vpow2.f32 %v352_v6  ;;  %vm336_vm6 = vcmp.gt.f32.partialorder %v1130_v7, 20.0  ;;  %v333_v55 = vld [vmem:[%s1151_s16 + $0x10] sm:$0xff]  ;;  %v332_v62 = vld [vmem:[%s1151_s16 + $0x8] sm:$0xff]  ;;  %vm527_vm9 = vcmp.gt.f32.partialorder %v1136_v13, 20.0 }
  0x11   : > { %973 = vpow2.f32 %v350_v8  ;;  %v322_v1 = vld [vmem:[%s1434_s1 + $0x10] sm:$0xff]  ;;  %v321_v6 = vld [vmem:[%s1434_s1 + $0x8] sm:$0xff]  ;;  %v331_v8 = vld [vmem:[%s1151_s16] sm:$0xff]  ;;  %v1209_v21 = vmul.f32 %v333_v55, %v333_v55 }
  0x12   : > { %975 = vpow2.f32 %v348_v9 }
  0x13   : > { %977 = vpow2.f32 %v346_v11 }
  0x16   : > { %v972_v12 = vpop.eup %971 }
  0x17   : > { %v974_v14 = vpop.eup %973  ;;  %v383_v15 = vadd.f32 1.0, %v972_v12  ;;  %v386_v16 = vmul.f32 -0.5, %v972_v12  ;;  %v389_v25 = vand.u32 2147483647, %v972_v12 }
  0x18   : > { %v976_v17 = vpop.eup %975  ;;  %v374_v18 = vadd.f32 1.0, %v974_v14  ;;  %v377_v19 = vmul.f32 -0.5, %v974_v14  ;;  %v380_v28 = vand.u32 2147483647, %v974_v14 }
  0x19   : > { %979 = vlog2.f32 %v383_v15  ;;  %v365_v20 = vadd.f32 1.0, %v976_v17  ;;  %v978_v22 = vpop.eup %977  ;;  %v387_v23 = vadd.f32 1.0, %v386_v16  ;;  %v368_v24 = vmul.f32 -0.5, %v976_v17  ;;  %v320_v16 = vld [vmem:[%s1434_s1] sm:$0xff] }
  0x1a   : > { %981 = vlog2.f32 %v374_v18  ;;  %v378_v26 = vadd.f32 1.0, %v377_v19  ;;  %v356_v27 = vadd.f32 1.0, %v978_v22  ;;  %v359_v30 = vmul.f32 -0.5, %v978_v22 }
  0x1b   : > { %983 = vlog2.f32 %v365_v20  ;;  %v369_v29 = vadd.f32 1.0, %v368_v24  ;;  %v371_v31 = vand.u32 2147483647, %v976_v17  ;;  %v388_v33 = vmul.f32 %v972_v12, %v387_v23 }
  0x1c   : > { %985 = vlog2.f32 %v356_v27  ;;  %v360_v34 = vadd.f32 1.0, %v359_v30  ;;  %vm1142_vm0 = vcmp.lt.f32.partialorder %v389_v25, 0.0004427343  ;;  %v379_v37 = vmul.f32 %v974_v14, %v378_v26 }
  0x1d   : > { %v362_v38 = vand.u32 2147483647, %v978_v22  ;;  %987 = vpow2.f32 %v540_v32  ;;  %vm1154_vm2 = vcmp.lt.f32.partialorder %v380_v28, 0.0004427343  ;;  %v370_v42 = vmul.f32 %v976_v17, %v369_v29 }
  0x1e   : > { %vm1159_vm4 = vcmp.lt.f32.partialorder %v371_v31, 0.0004427343  ;;  %v361_v48 = vmul.f32 %v978_v22, %v360_v34  ;;  %v1204_v14 = vmul.f32 %v334_v50, %v334_v50  ;;  %v458_v26 = vmul.f32 %v332_v62, %v332_v62  ;;  %v319_v34 = vld [vmem:[%s1433_s0] sm:$0xff] }
  0x1f   : > { %v980_v35 = vpop.eup %979  ;;  %vm1171_vm7 = vcmp.lt.f32.partialorder %v362_v38, 0.0004427343  ;;  %v457_v29 = vmul.f32 %v331_v8, %v331_v8 }
  0x20   : > { %v982_v39 = vpop.eup %981  ;;  %v385_v40 = vmul.f32 0.6931472, %v980_v35 }
  0x21   : > { %v984_v43 = vpop.eup %983  ;;  %v376_v44 = vmul.f32 0.6931472, %v982_v39 }
  0x22   : > { %v391_v46 = vsel %vm1142_vm0, %v388_v33, %v385_v40  ;;  %v367_v47 = vmul.f32 0.6931472, %v984_v43  ;;  %v986_v49 = vpop.eup %985 }
  0x23   : > { %v404_v51 = vsel %vm339_vm1, %v1112_v0, %v391_v46  ;;  %v382_v52 = vsel %vm1154_vm2, %v379_v37, %v376_v44  ;;  %v358_v58 = vmul.f32 0.6931472, %v986_v49  ;;  %v988_v59 = vpop.eup %987 }
  0x24   : > { %v1175_v54 = vadd.f32 1e-06, %v404_v51  ;;  %v403_v56 = vsel %vm338_vm3, %v1118_v2, %v382_v52  ;;  %v373_v57 = vsel %vm1159_vm4, %v370_v42, %v367_v47  ;;  %v571_v9 = vadd.f32 1.0, %v988_v59  ;;  %v522_v47 = vld [vmem:[%s1230_s8 + $0x18] sm:$0xff] }
  0x25   : > { %v1184_v61 = vadd.f32 1e-06, %v403_v56  ;;  %v402_v63 = vsel %vm337_vm5, %v1123_v3, %v373_v57  ;;  %v364_v4 = vsel %vm1171_vm7, %v361_v48, %v358_v58  ;;  %v574_v17 = vmul.f32 -0.5, %v988_v59  ;;  %v511_v52 = vld [vmem:[%s1436_s3 + $0x18] sm:$0xff] }
  0x26   : > { %v414_v0 = vmul.f32 %v1175_v54, %v334_v50  ;;  %v407_v2 = vadd.f32 1e-06, %v402_v63  ;;  %v401_v3 = vsel %vm336_vm6, %v1130_v7, %v364_v4  ;;  %v577_v23 = vand.u32 2147483647, %v988_v59 }
  0x27   : > { %v413_v5 = vmul.f32 %v1184_v61, %v333_v55  ;;  %v406_v12 = vadd.f32 1e-06, %v401_v3  ;;  %v575_v22 = vadd.f32 1.0, %v574_v17  ;;  %vm494_vm3 = vcmask 253952  }
  0x28   : > { %v419_v10 = vadd.f32 %v414_v0, %v323_v60  ;;  %v412_v11 = vmul.f32 %v407_v2, %v332_v62  ;;  %989 = vlog2.f32 %v407_v2  ;;  %vm578_vm10 = vcmp.lt.f32.partialorder %v577_v23, 0.0004427343  ;;  %v937_v60 = vld [vmem:[%s1434_s1 + $0x48] sm:$0x1]  ;;  %v942_v2 = vld [vmem:[%s1436_s3 + $0x38] sm:$0xff] }
  0x29   : > { %v418_v15 = vadd.f32 %v413_v5, %v322_v1  ;;  %991 = vlog2.f32 %v571_v9  ;;  %v411_v20 = vmul.f32 %v406_v12, %v331_v8  ;;  %v576_v35 = vmul.f32 %v988_v59, %v575_v22  ;;  %v941_v5 = vld [vmem:[%s1436_s3 + $0x30] sm:$0xff]  ;;  %v1269_v9 = vld [vmem:[%s1436_s3 + $0x28] sm:$0xff] }
  0x2a   : > { %438 = vmatpush.msra.mxu0 %v419_v10  ;;  %v450_v18 = vmul.f32 10.0, %v419_v10  ;;  %v417_v19 = vadd.f32 %v412_v11, %v321_v6  ;;  %993 = vlog2.f32 %v406_v12  ;;  %v345_v62 = vmin.f32 %v937_v60, 20.0 }
  0x2b   : > { %v449_v7 = vmul.f32 10.0, %v418_v15  ;;  %v416_v27 = vadd.f32 %v411_v20, %v320_v16  ;;  %v531_v4 = vmin.f32 %v942_v2, 20.0  ;;  %v530_v8 = vmin.f32 %v941_v5, 20.0 }
  0x2c   : > { %v1211_v24 = vmul.f32 %v450_v18, %v450_v18  ;;  %439 = vmatpush.msra.mxu0 %v418_v15  ;;  %v448_v25 = vmul.f32 10.0, %v417_v19  ;;  %v354_v63 = vmul.f32 1.442695, %v345_v62  ;;  %v529_v11 = vmin.f32 %v1269_v9, 20.0 }
  0x2d   : > { %v1213_v28 = vmul.f32 %v449_v7, %v449_v7  ;;  %v447_v33 = vmul.f32 10.0, %v416_v27  ;;  %v538_v6 = vmul.f32 1.442695, %v531_v4  ;;  %v536_v10 = vmul.f32 1.442695, %v530_v8  ;;  %v1276_v4 = vld [vmem:[%s1230_s8 + $0x10] sm:$0xff] }
  0x2e   : > { %v990_v30 = vpop.eup %989  ;;  %v465_v31 = vsub.f32 %v1211_v24, %v1204_v14  ;;  %440 = vmatpush.msra.mxu0 %v417_v19  ;;  %v453_v32 = vmul.f32 %v448_v25, %v448_v25  ;;  %995 = vpow2.f32 %v354_v63  ;;  %v534_v12 = vmul.f32 1.442695, %v529_v11  ;;  %v510_v11 = vld [vmem:[%s1436_s3 + $0x10] sm:$0xff]  ;;  %v1319_v24 = vld [vmem:[%s1436_s3 + $0x48] sm:$0x1] }
  0x2f   : > { %v992_v36 = vpop.eup %991  ;;  %v464_v37 = vsub.f32 %v1213_v28, %v1209_v21  ;;  %v1223_v40 = vmul.f32 0.6931472, %v990_v30  ;;  %v452_v41 = vmul.f32 %v447_v33, %v447_v33  ;;  %vm340_vm12 = vcmp.gt.f32.partialorder %v937_v60, 20.0 }
  0x30   : > { %v994_v38 = vpop.eup %993  ;;  %v463_v39 = vsub.f32 %v453_v32, %v458_v26  ;;  %441 = vmatpush.msra.mxu0 %v416_v27  ;;  %v573_v42 = vmul.f32 0.6931472, %v992_v36  ;;  %vm526_vm14 = vcmp.gt.f32.partialorder %v942_v2, 20.0  ;;  %vm525_vm0 = vcmp.gt.f32.partialorder %v941_v5, 20.0 }
  0x31   : > { %938 = vmatmul.msk.f32.vlgmr.msra.gmra.mxu0 %vm422_vm8, %v319_v34  ;;  %v462_v44 = vsub.f32 %v452_v41, %v457_v29  ;;  %v1235_v45 = vmul.f32 0.6931472, %v994_v38  ;;  %vm524_vm2 = vcmp.gt.f32.partialorder %v1269_v9, 20.0  ;;  %vm528_vm5 = vcmp.gt.f32.partialorder %v1319_v24, 20.0 }
  0x32   : > { %v1233_v43 = vmul.f32 0.5, %v463_v39  ;;  %v579_v46 = vsel %vm578_vm10, %v576_v35, %v573_v42  ;;  %vm674_vm6 = vcmask 130048   ;;  %vm682_vm7 = vcmask 122880  }
  0x33   : > { %v592_v48 = vsel %vm527_vm9, %v1136_v13, %v579_v46  ;;  %v1241_v50 = vmul.f32 0.5, %v462_v44  ;;  %v1251_v13 = vmul.f32 %v522_v47, %v522_v47 }
  0x34   : > { %v483_v49 = vsub.f32 %v1233_v43, %v1223_v40  ;;  %v1243_v51 = vadd.f32 1e-06, %v592_v48  ;;  %v996_v0 = vpop.eup %995 }
  0x35   : > { %v482_v53 = vsub.f32 %v1241_v50, %v1235_v45  ;;  %v392_v1 = vadd.f32 1.0, %v996_v0  ;;  %v395_v3 = vmul.f32 -0.5, %v996_v0  ;;  %v398_v17 = vand.u32 2147483647, %v996_v0 }
  0x36   : > { %v602_v55 = vmul.f32 %v1243_v51, %v522_v47  ;;  %v335_v47 = vld [vmem:[%s1151_s16 + $0x20] sm:$0x1]  ;;  %v488_v14 = vsel %vm422_vm8, %v483_v49, 0.0  ;;  %v533_v50 = vmin.f32 %v1319_v24, 20.0 }
  0x37   : > { %997 = vlog2.f32 %v392_v1  ;;  %v396_v15 = vadd.f32 1.0, %v395_v3  ;;  %vm399_vm11 = vcmp.lt.f32.partialorder %v398_v17, 0.0004427343  ;;  %v487_v21 = vsel %vm422_vm8, %v482_v53, 0.0 }
  0x38   : > { %v607_v56 = vadd.f32 %v602_v55, %v511_v52  ;;  %999 = vpow2.f32 %v538_v6  ;;  %v542_v49 = vmul.f32 1.442695, %v533_v50  ;;  %v512_v50 = vld [vmem:[%s1436_s3 + $0x20] sm:$0x1] }
  0x39   : > { %1001 = vpow2.f32 %v536_v10  ;;  %v397_v20 = vmul.f32 %v996_v0, %v396_v15 }
  0x3a   : > { %625 = vmatpush.msra.mxu1 %v607_v56  ;;  %v637_v57 = vmul.f32 10.0, %v607_v56  ;;  %1003 = vpow2.f32 %v534_v12  ;;  %v520_v12 = vld [vmem:[%s1230_s8 + $0x8] sm:$0xff] }
  0x3c   : > { %v1253_v58 = vmul.f32 %v637_v57, %v637_v57 }
  0x3d   : > { %v998_v16 = vpop.eup %997 }
  0x3e   : > { %v652_v59 = vsub.f32 %v1253_v58, %v1251_v13  ;;  %v1000_v18 = vpop.eup %999  ;;  %v394_v19 = vmul.f32 0.6931472, %v998_v16 }
  0x3f   : > { %v562_v7 = vadd.f32 1.0, %v1000_v18  ;;  %v1002_v22 = vpop.eup %1001  ;;  %v565_v29 = vmul.f32 -0.5, %v1000_v18  ;;  %v568_v35 = vand.u32 2147483647, %v1000_v18 }
  0x40   : > { %v553_v23 = vadd.f32 1.0, %v1002_v22  ;;  %v1004_v25 = vpop.eup %1003  ;;  %v400_v26 = vsel %vm399_vm11, %v397_v20, %v394_v19  ;;  %v556_v33 = vmul.f32 -0.5, %v1002_v22  ;;  %v559_v46 = vand.u32 2147483647, %v1002_v22  ;;  %v519_v19 = vld [vmem:[%s1230_s8] sm:$0xff] }
  0x41   : > { %1005 = vlog2.f32 %v562_v7  ;;  %v544_v27 = vadd.f32 1.0, %v1004_v25  ;;  %v405_v30 = vsel %vm340_vm12, %v937_v60, %v400_v26  ;;  %v566_v32 = vadd.f32 1.0, %v565_v29 }
  0x42   : > { %1007 = vlog2.f32 %v553_v23  ;;  %v557_v39 = vadd.f32 1.0, %v556_v33  ;;  %v547_v41 = vmul.f32 -0.5, %v1004_v25  ;;  %v410_v44 = vadd.f32 1e-06, %v405_v30 }
  0x43   : > { %1009 = vlog2.f32 %v544_v27  ;;  %v567_v38 = vmul.f32 %v1000_v18, %v566_v32  ;;  %vm569_vm13 = vcmp.lt.f32.partialorder %v568_v35, 0.0004427343  ;;  %vm560_vm15 = vcmp.lt.f32.partialorder %v559_v46, 0.0004427343 }
  0x44   : > { %v558_v55 = vmul.f32 %v1002_v22, %v557_v39  ;;  %v548_v60 = vadd.f32 1.0, %v547_v41  ;;  %v550_v62 = vand.u32 2147483647, %v1004_v25  ;;  %1011 = vlog2.f32 %v1184_v61  ;;  %v509_v61 = vld [vmem:[%s1436_s3 + $0x8] sm:$0xff] }
  0x45   : > { %1013 = vlog2.f32 %v1175_v54  ;;  %v508_v54 = vld [vmem:[%s1436_s3] sm:$0xff]  ;;  %v469_v27 = vmul.f32 0.5, %v464_v37  ;;  %v470_v30 = vmul.f32 0.5, %v465_v31  ;;  %v461_v33 = vmul.f32 %v335_v47, %v335_v47 }
  0x46   : > { %v549_v8 = vmul.f32 %v1004_v25, %v548_v60  ;;  %vm551_vm1 = vcmp.lt.f32.partialorder %v550_v62, 0.0004427343  ;;  %1015 = vlog2.f32 %v1243_v51  ;;  %v489_v31 = vadd.f32 %v488_v14, %v487_v21 }
  0x47   : > { %v1006_v34 = vpop.eup %1005  ;;  %1017 = vlog2.f32 %v410_v44  ;;  %v1327_v40 = vmul.f32 0.5, %v652_v59  ;;  %v645_v59 = vmul.f32 %v520_v12, %v520_v12  ;;  %v644_v60 = vmul.f32 %v519_v19, %v519_v19 }
  0x48   : > { %v564_v36 = vmul.f32 0.6931472, %v1006_v34  ;;  %v1008_v42 = vpop.eup %1007  ;;  %1019 = vpow2.f32 %v542_v49 }
  0x49   : > { %v555_v52 = vmul.f32 0.6931472, %v1008_v42  ;;  %v1010_v56 = vpop.eup %1009 }
  0x4a   : > { %v570_v48 = vsel %vm569_vm13, %v567_v38, %v564_v36  ;;  %v546_v1 = vmul.f32 0.6931472, %v1010_v56  ;;  %v1012_v25 = vpop.eup %1011 }
  0x4b   : > { %v591_v57 = vsel %vm526_vm14, %v942_v2, %v570_v48  ;;  %v561_v0 = vsel %vm560_vm15, %v558_v55, %v555_v52  ;;  %v415_v2 = vmul.f32 %v410_v44, %v335_v47  ;;  %v477_v34 = vmul.f32 0.6931472, %v1012_v25 }
  0x4c   : > { %v1273_v63 = vadd.f32 1e-06, %v591_v57  ;;  %v590_v6 = vsel %vm525_vm0, %v941_v5, %v561_v0  ;;  %v552_v15 = vsel %vm551_vm1, %v549_v8, %v546_v1  ;;  %v324_v5 = vld [vmem:[%s1434_s1 + $0x20] sm:$0x1]  ;;  %v646_v1 = vmul.f32 %v1276_v4, %v1276_v4 }
  0x4d   : > { %v595_v10 = vadd.f32 1e-06, %v590_v6  ;;  %v589_v18 = vsel %vm524_vm2, %v1269_v9, %v552_v15  ;;  %v1295_v22 = vadd.f32 %v415_v2, %v324_v5  ;;  %v1014_v9 = vpop.eup %1013  ;;  %v484_v38 = vsub.f32 %v469_v27, %v477_v34 }
  0x4e   : > { %v601_v3 = vmul.f32 %v1273_v63, %v1276_v4  ;;  %v594_v20 = vadd.f32 1e-06, %v589_v18  ;;  %v479_v35 = vmul.f32 0.6931472, %v1014_v9  ;;  %v1016_v51 = vpop.eup %1015  ;;  %vm805_vm14 = vcmask 31744  }
  0x4f   : > { %v600_v17 = vmul.f32 %v595_v10, %v520_v12  ;;  %v451_v26 = vmul.f32 10.0, %v1295_v22  ;;  %v490_v37 = vsel %vm422_vm8, %v484_v38, 0.0  ;;  %v1018_v53 = vpop.eup %1017  ;;  %v1329_v48 = vmul.f32 0.6931472, %v1016_v51  ;;  %v1344_v12 = vld [vmem:[%s1438_s5 + $0x20] sm:$0xff] }
  0x50   : > { %v606_v16 = vadd.f32 %v601_v3, %v510_v11  ;;  %v599_v23 = vmul.f32 %v594_v20, %v519_v19  ;;  %v485_v28 = vsub.f32 %v470_v30, %v479_v35  ;;  %v491_v41 = vadd.f32 %v490_v37, %v489_v31  ;;  %v1020_v62 = vpop.eup %1019  ;;  %v1339_v11 = vld [vmem:[%s1438_s5 + $0x18] sm:$0xff]  ;;  %v523_v31 = vld [vmem:[%s1230_s8 + $0x20] sm:$0x1]  ;;  %s956_s8 = smul.u32 24, %s1458_s25 }
  0x51   : > { %v605_v7 = vadd.f32 %v600_v17, %v509_v61  ;;  %v456_v32 = vmul.f32 %v451_v26, %v451_v26  ;;  %v481_v43 = vmul.f32 0.6931472, %v1018_v53  ;;  %1021 = vlog2.f32 %v595_v10 }
  0x52   : > { %626 = vmatpush.msra.mxu1 %v606_v16  ;;  %v604_v29 = vadd.f32 %v599_v23, %v508_v54  ;;  %v492_v45 = vsel %vm422_vm8, %v485_v28, 0.0  ;;  %v636_v52 = vmul.f32 10.0, %v606_v16  ;;  %v672_v56 = vsub.f32 %v1327_v40, %v1329_v48  ;;  %s313_s16 = scalar_lea.vmem %s1439_s6, %s956_s8  ;;  %s318_s8 = scalar_lea.vmem %s1440_s7, %s954_s14 }
  0x53   : > { %v466_v36 = vsub.f32 %v456_v32, %v461_v33  ;;  %v635_v42 = vmul.f32 10.0, %v605_v7  ;;  %v493_v44 = vadd.f32 %v492_v45, %v491_v41  ;;  %1023 = vlog2.f32 %v594_v20 }
  0x54   : > { %627 = vmatpush.msra.mxu1 %v605_v7  ;;  %v634_v46 = vmul.f32 10.0, %v604_v29  ;;  %v641_v0 = vmul.f32 %v636_v52, %v636_v52  ;;  %1025 = vlog2.f32 %v1273_v63  ;;  %v580_v6 = vadd.f32 1.0, %v1020_v62  ;;  %v1349_v63 = vld [vmem:[%s1438_s5 + $0x28] sm:$0x1] }
  0x55   : > { %v471_v39 = vmul.f32 0.5, %v466_v36  ;;  %v640_v58 = vmul.f32 %v635_v42, %v635_v42  ;;  %v583_v8 = vmul.f32 -0.5, %v1020_v62  ;;  %v421_v4 = vperm.slane %v1295_v22, 0 }
  0x56   : > { %628 = vmatpush.msra.mxu1 %v604_v29  ;;  %v639_v57 = vmul.f32 %v634_v46, %v634_v46  ;;  %1027 = vlog2.f32 %v580_v6  ;;  %v651_v5 = vsub.f32 %v641_v0, %v646_v1  ;;  %v586_v17 = vand.u32 2147483647, %v1020_v62 }
  0x57   : > { %v486_v47 = vsub.f32 %v471_v39, %v481_v43  ;;  %v1022_v3 = vpop.eup %1021  ;;  %v650_v10 = vsub.f32 %v640_v58, %v645_v59  ;;  %v584_v16 = vadd.f32 1.0, %v583_v8  ;;  %v709_v18 = vmin.f32 %v1339_v11, 20.0 }
  0x58   : > { %v649_v2 = vsub.f32 %v639_v57, %v644_v60  ;;  %v710_v61 = vmin.f32 %v1344_v12, 20.0  ;;  %v711_v19 = vmin.f32 %v1349_v63, 20.0  ;;  %v662_v7 = vmul.f32 0.6931472, %v1022_v3 }
  0x59   : > { %v495_v55 = vsel %vm494_vm3, %v486_v47, 0.0  ;;  %v1024_v15 = vpop.eup %1023  ;;  %v655_v20 = vmul.f32 0.5, %v650_v10  ;;  %v712_v26 = vmul.f32 1.442695, %v709_v18  ;;  %v585_v29 = vmul.f32 %v1020_v62, %v584_v16 }
  0x5a   : > { %v496_v13 = vadd.f32 %v495_v55, %v493_v44  ;;  %v654_v54 = vmul.f32 0.5, %v649_v2  ;;  %v660_v23 = vmul.f32 0.6931472, %v1024_v15  ;;  %v1026_v25 = vpop.eup %1025  ;;  %v714_v9 = vmul.f32 1.442695, %v710_v61 }
  0x5b   : > { %v716_v27 = vmul.f32 1.442695, %v711_v19  ;;  %v656_v22 = vmul.f32 0.5, %v651_v5  ;;  %vm1355_vm4 = vcmp.lt.f32.partialorder %v586_v17, 0.0004427343  ;;  %1029 = vpow2.f32 %v712_v26 }
  0x5c   : > { %497 = vadd.xlane.f32.xlu0 %v496_v13  ;;  %v1028_v30 = vpop.eup %1027  ;;  %v664_v34 = vmul.f32 0.6931472, %v1026_v25  ;;  %1031 = vpow2.f32 %v714_v9  ;;  %v670_v38 = vsub.f32 %v655_v20, %v662_v7  ;;  %v669_v21 = vsub.f32 %v654_v54, %v660_v23 }
  0x5d   : > { %v582_v35 = vmul.f32 0.6931472, %v1028_v30  ;;  %1033 = vpow2.f32 %v716_v27  ;;  %vm706_vm9 = vcmp.gt.f32.partialorder %v1339_v11, 20.0  ;;  %vm707_vm11 = vcmp.gt.f32.partialorder %v1344_v12, 20.0  ;;  %v703_v30 = vld [vmem:[%s313_s16] sm:$0xff] }
  0x5e   : > { %v671_v39 = vsub.f32 %v656_v22, %v664_v34  ;;  %v675_v53 = vsel %vm674_vm6, %v669_v21, 0.0  ;;  %v676_v41 = vsel %vm674_vm6, %v670_v38, 0.0  ;;  %vm708_vm13 = vcmp.gt.f32.partialorder %v1349_v63, 20.0  ;;  %v696_v21 = vld [vmem:[%s1438_s5] sm:$0xff] }
  0x5f   : > { %v588_v28 = vsel %vm1355_vm4, %v585_v29, %v582_v35  ;;  %v677_v59 = vadd.f32 %v676_v41, %v675_v53  ;;  %vm809_vm15 = vcmask 24576   ;;  %vm823_vm0 = vcmask 15360  }
  0x60   : > { %v593_v37 = vsel %vm528_vm5, %v1319_v24, %v588_v28  ;;  %v648_v24 = vmul.f32 %v523_v31, %v523_v31  ;;  %v678_v13 = vsel %vm674_vm6, %v671_v39, 0.0  ;;  %v705_v28 = vld [vmem:[%s313_s16 + $0x10] sm:$0x1]  ;;  %vm840_vm3 = vcmask 31760  }
  0x61   : > { %v598_v51 = vadd.f32 1e-06, %v593_v37  ;;  %v1030_v45 = vpop.eup %1029  ;;  %v679_v15 = vadd.f32 %v678_v13, %v677_v59 }
  0x62   : > { %v1032_v43 = vpop.eup %1031  ;;  %v718_v42 = vadd.f32 1.0, %v1030_v45  ;;  %v721_v44 = vmul.f32 -0.5, %v1030_v45  ;;  %v724_v60 = vand.u32 2147483647, %v1030_v45 }
  0x63   : > { %v603_v49 = vmul.f32 %v598_v51, %v523_v31  ;;  %1035 = vlog2.f32 %v598_v51  ;;  %v1034_v46 = vpop.eup %1033  ;;  %v727_v47 = vadd.f32 1.0, %v1032_v43  ;;  %v730_v52 = vmul.f32 -0.5, %v1032_v43 }
  0x64   : > { %1037 = vlog2.f32 %v718_v42  ;;  %v736_v58 = vadd.f32 1.0, %v1034_v46  ;;  %v722_v57 = vadd.f32 1.0, %v721_v44  ;;  %v739_v1 = vmul.f32 -0.5, %v1034_v46 }
  0x65   : > { %v1370_v55 = vadd.f32 %v603_v49, %v512_v50  ;;  %1039 = vlog2.f32 %v727_v47  ;;  %v731_v0 = vadd.f32 1.0, %v730_v52  ;;  %v733_v6 = vand.u32 2147483647, %v1032_v43 }
  0x66   : > { %1041 = vlog2.f32 %v736_v58  ;;  %v740_v10 = vadd.f32 1.0, %v739_v1  ;;  %v742_v2 = vand.u32 2147483647, %v1034_v46  ;;  %v723_v5 = vmul.f32 %v1030_v45, %v722_v57 }
  0x67   : > { %v638_v62 = vmul.f32 10.0, %v1370_v55  ;;  %v732_v19 = vmul.f32 %v1032_v43, %v731_v0  ;;  %vm1387_vm10 = vcmp.lt.f32.partialorder %v733_v6, 0.0004427343  ;;  %v787_v49 = vmul.f32 %v703_v30, %v703_v30 }
  0x68   : > { %vm1392_vm12 = vcmp.lt.f32.partialorder %v742_v2, 0.0004427343  ;;  %v789_v52 = vmul.f32 %v705_v28, %v705_v28 }
  0x69   : > { %v1036_v8 = vpop.eup %1035  ;;  %v643_v3 = vmul.f32 %v638_v62, %v638_v62 }
  0x6a   : > { %v1038_v16 = vpop.eup %1037  ;;  %v668_v18 = vmul.f32 0.6931472, %v1036_v8 }
  0x6b   : > { %v653_v17 = vsub.f32 %v643_v3, %v648_v24  ;;  %v1040_v20 = vpop.eup %1039  ;;  %v720_v40 = vmul.f32 0.6931472, %v1038_v16 }
  0x6c   : > { %v1042_v7 = vpop.eup %1041  ;;  %v729_v23 = vmul.f32 0.6931472, %v1040_v20 }
  0x6d   : > { %v658_v54 = vmul.f32 0.5, %v653_v17  ;;  %v738_v27 = vmul.f32 0.6931472, %v1042_v7 }
  0x6e   : > { %v735_v22 = vsel %vm1387_vm10, %v732_v19, %v729_v23 }
  0x6f   : > { %v673_v29 = vsub.f32 %v658_v54, %v668_v18  ;;  %v746_v35 = vsel %vm707_vm11, %v1344_v12, %v735_v22  ;;  %v698_v12 = vld [vmem:[%s1438_s5 + $0x10] sm:$0x1] }
  0x70   : > { %v749_v31 = vadd.f32 1e-06, %v746_v35 }
  0x71   : > { %v683_v38 = vsel %vm682_vm7, %v673_v29, 0.0 }
  0xae   : > { %v443_v33 = vpop.f32.mrf.mxu0 }
  0xaf   : > { %v444_v36 = vadd.f32 %v443_v33, %v421_v4  ;;  %v680_v4 = vsel %vm674_vm6, %v672_v56, 0.0  ;;  %v741_v56 = vmul.f32 %v1034_v46, %v740_v10  ;;  %v704_v33 = vld [vmem:[%s313_s16 + $0x8] sm:$0xff] }
  0xb0   : > { %v681_v26 = vadd.f32 %v680_v4, %v679_v15  ;;  %v752_v45 = vmul.f32 %v749_v31, %v704_v33  ;;  %v788_v44 = vmul.f32 %v704_v33, %v704_v33 }
  0xb1   : > { %v446_v14 = vmax.f32 %v444_v36, 0.0  ;;  %v744_v34 = vsel %vm1392_vm12, %v741_v56, %v738_v27  ;;  %v609_v56 = vperm.slane %v1370_v55, 0 }
  0xb2   : > { %v684_v37 = vadd.f32 %v683_v38, %v681_v26 }
  0xb3   : > { %945 = vmatmul.msk.f32.vlgmr.msra.gmra.mxu1 %vm422_vm8, %v446_v14  ;;  %vm1379_vm8 = vcmp.lt.f32.partialorder %v724_v60, 0.0004427343  ;;  %v747_v14 = vsel %vm708_vm13, %v1349_v63, %v744_v34 }
  0xb4   : > { %v726_v9 = vsel %vm1379_vm8, %v723_v5, %v720_v40  ;;  %v750_v51 = vadd.f32 1e-06, %v747_v14  ;;  %685 = vadd.xlane.f32.xlu0 %v684_v37 }
  0xb5   : > { %v745_v32 = vsel %vm706_vm9, %v1339_v11, %v726_v9  ;;  %v697_v11 = vld [vmem:[%s1438_s5 + $0x8] sm:$0xff] }
  0xb6   : > { %v748_v36 = vadd.f32 1e-06, %v745_v32  ;;  %v753_v50 = vmul.f32 %v750_v51, %v705_v28  ;;  %v755_v63 = vadd.f32 %v752_v45, %v697_v11 }
  0xb8   : > { %v751_v39 = vmul.f32 %v748_v36, %v703_v30  ;;  %1043 = vlog2.f32 %v748_v36  ;;  %v1418_v41 = vadd.f32 %v753_v50, %v698_v12  ;;  %v782_v42 = vmul.f32 10.0, %v755_v63  ;;  %775 = vmatpush.msra.mxu2 %v755_v63 }
  0xb9   : > { %1045 = vlog2.f32 %v749_v31 }
  0xba   : > { %v754_v53 = vadd.f32 %v751_v39, %v696_v21  ;;  %1047 = vlog2.f32 %v750_v51  ;;  %v783_v24 = vmul.f32 10.0, %v1418_v41  ;;  %v785_v58 = vmul.f32 %v782_v42, %v782_v42 }
  0xbb   : > { %v757_v11 = vperm.slane %v1418_v41, 0 }
  0xbc   : > { %v781_v43 = vmul.f32 10.0, %v754_v53  ;;  %776 = vmatpush.msra.mxu2 %v754_v53  ;;  %v786_v57 = vmul.f32 %v783_v24, %v783_v24  ;;  %v791_v0 = vsub.f32 %v785_v58, %v788_v44 }
  0xbe   : > { %v1044_v46 = vpop.eup %1043  ;;  %v784_v47 = vmul.f32 %v781_v43, %v781_v43  ;;  %v792_v6 = vsub.f32 %v786_v57, %v789_v52  ;;  %v794_v10 = vmul.f32 0.5, %v791_v0 }
  0xbf   : > { %v1046_v13 = vpop.eup %1045  ;;  %v797_v62 = vmul.f32 0.6931472, %v1044_v46 }
  0xc0   : > { %v1048_v59 = vpop.eup %1047  ;;  %v790_v60 = vsub.f32 %v784_v47, %v787_v49  ;;  %v799_v1 = vmul.f32 0.6931472, %v1046_v13  ;;  %v795_v2 = vmul.f32 0.5, %v792_v6 }
  0xc1   : > { %v801_v3 = vmul.f32 0.6931472, %v1048_v59 }
  0xc2   : > { %v793_v8 = vmul.f32 0.5, %v790_v60  ;;  %v803_v4 = vsub.f32 %v794_v10, %v799_v1 }
  0xc3   : > { %v804_v5 = vsub.f32 %v795_v2, %v801_v3 }
  0xc4   : > { %v802_v15 = vsub.f32 %v793_v8, %v797_v62  ;;  %v807_v17 = vsel %vm805_vm14, %v803_v4, 0.0 }
  0xc5   : > { %v810_v61 = vsel %vm809_vm15, %v804_v5, 0.0 }
  0xc6   : > { %v806_v16 = vsel %vm805_vm14, %v802_v15, 0.0 }
  0xc7   : > { %v808_v18 = vadd.f32 %v807_v17, %v806_v16 }
  0xc9   : > { %v811_v19 = vadd.f32 %v810_v61, %v808_v18 }
  0xcb   : > { %812 = vadd.xlane.f32.xlu1 %v811_v19 }
  0xcf   : > { %v498_v20 = vpop.xlane.xlu0 %497 }
  0xd0   : > { %v499_v40 = vrot.slane %v498_v20, 4 }
  0xd2   : > { %v500_v48 = vadd.f32 %v499_v40, %v498_v20 }
  0xd4   : > { %v501_v7 = vrot.slane %v500_v48, 2 }
  0xd6   : > { %v502_v25 = vadd.f32 %v501_v7, %v500_v48 }
  0xd8   : > { %v503_v9 = vrot.slane %v502_v25, 1 }
  0xda   : > { %v504_v27 = vadd.f32 %v503_v9, %v502_v25 }
  0xdc   : > { %957 = vpush %v504_v27 }
 0x10d   : > { %s958_s28 = spop %957 }
 0x10e   : > { %s939_s29 = sadd.f32 -2431.5298, %s958_s28 }
 0x127   : > { %v686_v29 = vpop.xlane.xlu0 %685 }
 0x128   : > { %v687_v30 = vrot.slane %v686_v29, 4 }
 0x12a   : > { %v688_v22 = vadd.f32 %v687_v30, %v686_v29 }
 0x12c   : > { %v689_v32 = vrot.slane %v688_v22, 2 }
 0x12e   : > { %v690_v33 = vadd.f32 %v689_v32, %v688_v22 }
 0x130   : > { %v630_v54 = vpop.f32.mrf.mxu1  ;;  %v691_v34 = vrot.slane %v690_v33, 1 }
 0x131   : > { %v631_v23 = vadd.f32 %v630_v54, %v609_v56 }
 0x132   : > { %v692_v35 = vadd.f32 %v691_v34, %v690_v33 }
 0x133   : > { %v633_v26 = vmax.f32 %v631_v23, 0.0 }
 0x134   : > { %959 = vpush %v692_v35 }
 0x135   : > { %950 = vmatmul.msk.f32.vlgmr.msra.gmra.mxu2 %vm674_vm6, %v633_v26 }
 0x13e   : > { %v813_v36 = vpop.xlane.xlu1 %812 }
 0x13f   : > { %v814_v55 = vrot.slane %v813_v36, 4 }
 0x141   : > { %v815_v38 = vadd.f32 %v814_v55, %v813_v36 }
 0x143   : > { %v816_v21 = vrot.slane %v815_v38, 2 }
 0x145   : > { %v817_v28 = vadd.f32 %v816_v21, %v815_v38 }
 0x147   : > { %v818_v14 = vrot.slane %v817_v28, 1 }
 0x149   : > { %v819_v31 = vadd.f32 %v818_v14, %v817_v28 }
 0x14b   : > { %961 = vpush %v819_v31 }
 0x165   : > { %s960_s30 = spop %959 }
 0x166   : > { %s694_s9 = sadd.f32 %s960_s30, %s939_s29 }
 0x168   : > { %s946_s10 = sadd.f32 -1215.7649, %s694_s9 }
 0x17c   : > { %s962_s11 = spop %961 }
 0x17d   : > { %s821_s12 = sadd.f32 %s962_s11, %s946_s10 }
 0x17f   : > { %s951_s13 = sadd.f32 -156.57579, %s821_s12 }
 0x181   : > { %v842_v37 = vstv %s951_s13 }
 0x182   : > { %843 = vst.msk [vmem:[%s318_s8 + $0x8] sm:$0x1] %vm809_vm15, %v842_v37 }
 0x1b8   : > { %v778_v51 = vpop.f32.mrf.mxu2 }
 0x1b9   : > { %v779_v39 = vadd.f32 %v778_v51, %v757_v11 }
 0x1bb   : > { %v826_v12 = vmin.f32 %v779_v39, 20.0  ;;  %824 = vst.msk [vmem:[%s318_s8] sm:$0xff] %vm823_vm0, %v779_v39  ;;  %vm825_vm2 = vcmp.gt.f32.partialorder %v779_v39, 20.0 }
 0x1bd   : > { %v827_v45 = vmul.f32 1.442695, %v826_v12 }
 0x1bf   : > { %1049 = vpow2.f32 %v827_v45 }
 0x1c5   : > { %v1050_v50 = vpop.eup %1049 }
 0x1c6   : > { %v829_v53 = vadd.f32 1.0, %v1050_v50  ;;  %v832_v63 = vmul.f32 -0.5, %v1050_v50  ;;  %v835_v49 = vand.u32 2147483647, %v1050_v50 }
 0x1c8   : > { %1051 = vlog2.f32 %v829_v53  ;;  %v833_v43 = vadd.f32 1.0, %v832_v63  ;;  %vm836_vm1 = vcmp.lt.f32.partialorder %v835_v49, 0.0004427343 }
 0x1ca   : > { %v834_v46 = vmul.f32 %v1050_v50, %v833_v43 }
 0x1ce   : > { %v1052_v42 = vpop.eup %1051 }
 0x1cf   : > { %v831_v44 = vmul.f32 0.6931472, %v1052_v42 }
 0x1d1   : > { %v837_v24 = vsel %vm836_vm1, %v834_v46, %v831_v44 }
 0x1d2   : > { %v838_v41 = vsel %vm825_vm2, %v779_v39, %v837_v24 }
 0x1d3   : > { %v839_v47 = vadd.f32 1e-06, %v838_v41 }
 0x1d5   : > { %841 = vst.msk [vmem:[%s318_s8] sm:$0xff] %vm840_vm3, %v839_v47 }
 0x1d6 PF: > { %s17_s24 = sadd.s32 1, %s1059_s24  }
 0x1d7   : > { %p14_p4 = scmp.ge.s32.totalorder %s17_s24, 6  }
 0x1d9   :  { %16 = sbr.rel (!%p14_p4) target bundleno = 1 (0x1), region = 87 }

</bundles_post_ra>
